<compile_context>
chip_gen: v7x
topology: tpu7x:2x2x1
jax: 0.10.0
libtpu: 0.0.40
codegen_flags: <defaults>
</compile_context>

<pallas_src>
import jax
import jax.numpy as jnp
from jax.experimental import pallas as pl
from jax.experimental.pallas import tpu as pltpu


def _round_up(x, m):
    return (x + m - 1) // m * m


def _aligned_divisors(dim, align):
    """Ascending multiples of `align` that evenly divide `dim`.
    Falls back to [dim] (full-extent block) if none exist."""
    divs = [d for d in range(align, dim + 1, align) if dim % d == 0]
    return divs or [dim]


def _grouped_matmul_kernel(tile_expert_ref, tile_valid_ref, x_tile_ref,
                           x_ref, wt_ref, w_ref, o_ref):
    """One grid step computes one (TM, K) x (K, TN) expert-tile product.

    grid = (n_tiles, m_tiles); m is the inner, sequential axis so consecutive
    same-expert M-tiles reuse the resident weight block (DMA elided).  The
    full-K dot accumulates in f32 inside the MXU and the bf16 output tile is
    written lane-dense exactly once.  Dummy trailing M-tiles are skipped.
    """
    m = pl.program_id(1)
    valid = tile_valid_ref[m]

    @pl.when(valid == 1)
    def _():
        acc = jnp.dot(x_ref[...], w_ref[0], preferred_element_type=jnp.float32)
        o_ref[...] = (acc * wt_ref[...]).astype(o_ref.dtype)

    @pl.when(valid == 0)
    def _():
        # Pad-tile rows are never gathered back, but keep them deterministic.
        o_ref[...] = jnp.zeros_like(o_ref)


def moe_group_gemm_reduce_rs(intermediate_states, w, topk_ids, topk_weight, topk,
                             *, tm=256, tn=512):
    """Sorted grouped GEMM (megablocks) + per-token topk reduction.

    intermediate_states: (T*topk, K)  bf16
    w:                   (E, K, H)    bf16
    topk_ids:            (T*topk,)    int32   (flattened expert id per row)
    topk_weight:         (T*topk,)    float32 (flattened routing weight per row)
    returns:             (T, H)       bf16
    """
    TT, K = intermediate_states.shape
    E, K2, H = w.shape
    assert K == K2 and TT % topk == 0
    T = TT // topk
    dtype = intermediate_states.dtype
    itemsize = jnp.dtype(dtype).itemsize

    # ---- tile selection (16-aligned tm for bf16 sublane packing; tn a
    #      128-aligned divisor of H; footprint capped at a v7x-safe budget) ---
    tm = max(16, min((tm // 16) * 16, _round_up(TT, 16)))
    tn_candidates = _aligned_divisors(H, 128)
    tn = max([d for d in tn_candidates if d <= tn] or [tn_candidates[0]])

    def _footprint(tm_, tn_):
        # double-buffered x block + w block + wt block + out block
        return 2 * (tm_ * K * itemsize + K * tn_ * itemsize
                    + tm_ * 4 + tm_ * tn_ * itemsize)

    VMEM_BUDGET = 36 * 2**20          # safe against v7x's 64 MiB physical VMEM
    while _footprint(tm, tn) > VMEM_BUDGET:
        smaller_tn = [d for d in tn_candidates if d < tn]
        if smaller_tn:
            tn = max(smaller_tn)
        elif tm > 16:
            tm = max(16, (tm // 2) // 16 * 16)
        else:
            break
    vmem_limit = int(min(56 * 2**20,
                         max(32 * 2**20, _footprint(tm, tn) + 8 * 2**20)))

    num_m_tiles = (TT + tm - 1) // tm + E     # static bound on sum(ceil(g_e/tm))
    m_padded = num_m_tiles * tm
    n_tiles = H // tn

    # ---- expert-sorted, tile-padded dispatch layout (traceable jnp) ---------
    ids = topk_ids.astype(jnp.int32)
    sort_idx = jnp.argsort(ids, stable=True).astype(jnp.int32)
    sorted_ids = ids[sort_idx]

    group_sizes = jnp.bincount(ids, length=E).astype(jnp.int32)
    group_start = jnp.concatenate(
        [jnp.zeros((1,), jnp.int32),
         jnp.cumsum(group_sizes)[:-1].astype(jnp.int32)])
    rank_in_group = jnp.arange(TT, dtype=jnp.int32) - group_start[sorted_ids]

    tiles_per_group = (group_sizes + tm - 1) // tm
    csum_tiles = jnp.cumsum(tiles_per_group).astype(jnp.int32)
    tile_group_start = jnp.concatenate(
        [jnp.zeros((1,), jnp.int32), csum_tiles[:-1]])
    dst = (tile_group_start[sorted_ids] * tm + rank_in_group).astype(jnp.int32)

    # Gather-based dispatch: only small int32 / f32-vector scatters, then a
    # single row gather of the activations (no (m_padded, K) zero-fill pass).
    src_for_dst = jnp.zeros((m_padded,), jnp.int32).at[dst].set(sort_idx)
    x_sorted = intermediate_states[src_for_dst]      # pad rows alias row 0;
                                                     # weight 0, never read back
    wt_sorted = jnp.zeros((m_padded,), jnp.float32).at[dst].set(
        topk_weight[sort_idx].astype(jnp.float32))[:, None]
    dst_by_src = jnp.zeros((TT,), jnp.int32).at[sort_idx].set(dst)

    # Per-M-tile metadata, scalar-prefetched into SMEM.
    total_valid = csum_tiles[-1]
    last_valid = jnp.maximum(total_valid - 1, 0).astype(jnp.int32)
    tile_idx = jnp.arange(num_m_tiles, dtype=jnp.int32)
    tile_valid = (tile_idx < total_valid).astype(jnp.int32)
    te_raw = jnp.minimum(
        jnp.searchsorted(csum_tiles, tile_idx, side="right"), E - 1
    ).astype(jnp.int32)
    # Dummy trailing tiles alias the last valid tile's block indices so their
    # x / wt / w DMAs hit the identical-consecutive-index elision.
    tile_expert = jnp.where(tile_valid == 1, te_raw, te_raw[last_valid]).astype(jnp.int32)
    x_tile_idx = jnp.minimum(tile_idx, last_valid).astype(jnp.int32)

    grid = (n_tiles, num_m_tiles)     # m innermost -> weight reuse across m

    out_sorted = pl.pallas_call(
        _grouped_matmul_kernel,
        out_shape=jax.ShapeDtypeStruct((m_padded, H), dtype),
        grid_spec=pltpu.PrefetchScalarGridSpec(
            num_scalar_prefetch=3,            # tile_expert, tile_valid, x_tile_idx
            grid=grid,
            in_specs=[
                # activation tile (full K) of the sorted/padded buffer
                pl.BlockSpec((tm, K), lambda n, m, te, tv, xi: (xi[m], 0)),
                # per-row routing weights (f32)
                pl.BlockSpec((tm, 1), lambda n, m, te, tv, xi: (xi[m], 0)),
                # expert weight strip (full K x tn); reused across same-expert m
                pl.BlockSpec((1, K, tn), lambda n, m, te, tv, xi: (te[m], 0, n)),
            ],
            out_specs=pl.BlockSpec((tm, tn), lambda n, m, te, tv, xi: (m, n)),
        ),
        compiler_params=pltpu.CompilerParams(
            # n is shardable across v7x's 2 TensorCores; m stays sequential so
            # the consecutive-index weight-DMA elision is preserved.
            dimension_semantics=("parallel", "arbitrary"),
            vmem_limit_bytes=vmem_limit),
        cost_estimate=pl.CostEstimate(
            flops=2 * m_padded * K * H,
            transcendentals=0,
            bytes_accessed=int(n_tiles * m_padded * K * itemsize   # x per n-tile
                               + E * K * H * itemsize              # each expert once/n
                               + m_padded * H * itemsize           # bf16 output
                               + n_tiles * m_padded * 4)),         # routing weights
    )(tile_expert, tile_valid, x_tile_idx, x_sorted, wt_sorted, w)

    # ---- per-token topk reduction: gather back to (T, topk, H), dense f32 sum
    gathered = out_sorted[dst_by_src]                  # (TT, H) bf16
    final = gathered.reshape(T, topk, H).astype(jnp.float32).sum(axis=1)

    # reduce_scatter_tensor with world_size == 1 is the identity.
    # TODO(synk): multi-rank reduce-scatter would add a ring of
    # pltpu.make_async_remote_copy + semaphores under a collective_id.
    return final.astype(dtype)


def _select_experts(router_logits, topk):
    """Deterministic stand-in for select_experts: softmax -> top-k."""
    probs = jax.nn.softmax(router_logits.astype(jnp.float32), axis=-1)
    topk_weight, topk_ids = jax.lax.top_k(probs, topk)   # (T, topk)
    return topk_ids.astype(jnp.int32), topk_weight.astype(jnp.float32)


def _reference(x, w, ids, wts, topk):
    TT, K = x.shape
    T = TT // topk
    rows = jnp.einsum("tk,tkh->th", x.astype(jnp.float32),
                      w[ids].astype(jnp.float32))
    rows = (rows * wts[:, None].astype(jnp.float32)).astype(x.dtype)
    return rows.reshape(T, topk, -1).astype(jnp.float32).sum(axis=1).astype(x.dtype)


if __name__ == "__main__":
    # small, self-consistent shapes
    hidden_dim = 256
    intermediate_size_per_rank = 256   # intermediate_size // world_size, world_size == 1
    num_experts = 8
    topk = 2
    num_tokens = 64
    num_tokens_topk = num_tokens * topk

    key = jax.random.PRNGKey(0)
    k_x, k_w, k_r = jax.random.split(key, 3)

    intermediate_states = jax.random.normal(
        k_x, (num_tokens_topk, intermediate_size_per_rank), dtype=jnp.float32
    ).astype(jnp.bfloat16)
    w = (jax.random.normal(
        k_w, (num_experts, intermediate_size_per_rank, hidden_dim),
        dtype=jnp.float32) * 0.05).astype(jnp.bfloat16)
    router_logits = jax.random.normal(
        k_r, (num_tokens, num_experts), dtype=jnp.float32)

    topk_ids_2d, topk_weight_2d = _select_experts(router_logits, topk)
    topk_ids = topk_ids_2d.reshape(-1)          # (num_tokens_topk,)
    topk_weight = topk_weight_2d.reshape(-1)    # (num_tokens_topk,)

    # small demo tiles; production defaults are tm=256, tn=512 (budget-capped)
    out = moe_group_gemm_reduce_rs(
        intermediate_states, w, topk_ids, topk_weight, topk,
        tm=32, tn=128)
    out = jax.block_until_ready(out)

    ref = _reference(intermediate_states, w, topk_ids, topk_weight, topk)
    assert out.shape == (num_tokens, hidden_dim)
    assert jnp.allclose(out.astype(jnp.float32), ref.astype(jnp.float32),
                        rtol=5e-2, atol=5e-2)

    print("KERNEL_OK")
</pallas_src>

<mosaic_0001>
module attributes {stable_mosaic.version = 11 : i64} {
  func.func @_grouped_matmul_kernel(%arg0: i32, %arg1: i32, %arg2: memref<12xi32, #tpu.memory_space<smem>>, %arg3: memref<12xi32, #tpu.memory_space<smem>>, %arg4: memref<12xi32, #tpu.memory_space<smem>>, %arg5: memref<32x256xbf16, #tpu.memory_space<vmem>>, %arg6: memref<32x1xf32, #tpu.memory_space<vmem>>, %arg7: memref<1x256x128xbf16, #tpu.memory_space<vmem>>, %arg8: memref<32x128xbf16, #tpu.memory_space<vmem>>) attributes {dimension_semantics = [#tpu.dimension_semantics<parallel>, #tpu.dimension_semantics<arbitrary>], iteration_bounds = array<i64: 2, 12>, scalar_prefetch = 3 : i64, scratch_operands = 0 : i64, tpu.core_type = #tpu.core_type<tc>, window_params = [{transform_indices = @transform_0, window_bounds = array<i64: 32, 256>}, {transform_indices = @transform_1, window_bounds = array<i64: 32, 1>}, {transform_indices = @transform_2, window_bounds = array<i64: 1, 256, 128>}, {transform_indices = @transform_3, window_bounds = array<i64: 32, 128>}]} {
    %0 = arith.index_cast %arg1 : i32 to index
    %1 = memref.load %arg3[%0] : memref<12xi32, #tpu.memory_space<smem>>
    %c1_i32 = arith.constant 1 : i32
    %2 = arith.cmpi eq, %1, %c1_i32 : i32
    %3 = arith.extui %2 : i1 to i32
    %c0_i32 = arith.constant 0 : i32
    %4 = arith.cmpi ne, %3, %c0_i32 : i32
    scf.if %4 {
      %c0 = arith.constant 0 : index
      %c0_2 = arith.constant 0 : index
      %8 = vector.load %arg5[%c0, %c0_2] : memref<32x256xbf16, #tpu.memory_space<vmem>>, vector<32x256xbf16>
      %c0_3 = arith.constant 0 : index
      %c0_4 = arith.constant 0 : index
      %c0_5 = arith.constant 0 : index
      %9 = vector.load %arg7[%c0_3, %c0_4, %c0_5] : memref<1x256x128xbf16, #tpu.memory_space<vmem>>, vector<1x256x128xbf16>
      %10 = vector.shape_cast %9 : vector<1x256x128xbf16> to vector<256x128xbf16>
      %cst = arith.constant dense<0.000000e+00> : vector<32x128xf32>
      %11 = tpu.matmul %8, %10, %cst {dimension_numbers = #tpu.dot_dimension_numbers<[1], [0], [0], [1], [0, 0, 1, 1], [], []>} : vector<32x256xbf16>, vector<256x128xbf16>, vector<32x128xf32> -> vector<32x128xf32>
      %c0_6 = arith.constant 0 : index
      %c0_7 = arith.constant 0 : index
      %12 = vector.load %arg6[%c0_6, %c0_7] : memref<32x1xf32, #tpu.memory_space<vmem>>, vector<32x1xf32>
      %13 = vector.broadcast %12 : vector<32x1xf32> to vector<32x128xf32>
      %14 = arith.mulf %11, %13 : vector<32x128xf32>
      %15 = arith.truncf %14 : vector<32x128xf32> to vector<32x128xbf16>
      %c0_8 = arith.constant 0 : index
      %c0_9 = arith.constant 0 : index
      %16 = vector.load %arg8[%c0_8, %c0_9] : memref<32x128xbf16, #tpu.memory_space<vmem>>, vector<32x128xbf16>
      tpu.vector_store %arg8[%c0_8, %c0_9], %15 {strides = array<i32>} : memref<32x128xbf16, #tpu.memory_space<vmem>>, vector<32x128xbf16>,
    } else {
    }
    %c0_i32_0 = arith.constant 0 : i32
    %5 = arith.cmpi eq, %1, %c0_i32_0 : i32
    %6 = arith.extui %5 : i1 to i32
    %c0_i32_1 = arith.constant 0 : i32
    %7 = arith.cmpi ne, %6, %c0_i32_1 : i32
    scf.if %7 {
      %cst = arith.constant 0.000000e+00 : bf16
      %8 = vector.broadcast %cst : bf16 to vector<32x128xbf16>
      %c0 = arith.constant 0 : index
      %c0_2 = arith.constant 0 : index
      %9 = vector.load %arg8[%c0, %c0_2] : memref<32x128xbf16, #tpu.memory_space<vmem>>, vector<32x128xbf16>
      tpu.vector_store %arg8[%c0, %c0_2], %8 {strides = array<i32>} : memref<32x128xbf16, #tpu.memory_space<vmem>>, vector<32x128xbf16>,
    } else {
    }
    return
  }
  func.func @transform_0(%arg0: i32, %arg1: i32, %arg2: memref<12xi32, #tpu.memory_space<smem>>, %arg3: memref<12xi32, #tpu.memory_space<smem>>, %arg4: memref<12xi32, #tpu.memory_space<smem>>) -> (i32, i32) {
    %0 = arith.index_cast %arg1 : i32 to index
    %1 = memref.load %arg4[%0] : memref<12xi32, #tpu.memory_space<smem>>
    %c0_i32 = arith.constant 0 : i32
    %c0_i32_0 = arith.constant 0 : i32
    return %1, %c0_i32 : i32, i32
  }
  func.func @transform_1(%arg0: i32, %arg1: i32, %arg2: memref<12xi32, #tpu.memory_space<smem>>, %arg3: memref<12xi32, #tpu.memory_space<smem>>, %arg4: memref<12xi32, #tpu.memory_space<smem>>) -> (i32, i32) {
    %0 = arith.index_cast %arg1 : i32 to index
    %1 = memref.load %arg4[%0] : memref<12xi32, #tpu.memory_space<smem>>
    %c0_i32 = arith.constant 0 : i32
    %c0_i32_0 = arith.constant 0 : i32
    return %1, %c0_i32 : i32, i32
  }
  func.func @transform_2(%arg0: i32, %arg1: i32, %arg2: memref<12xi32, #tpu.memory_space<smem>>, %arg3: memref<12xi32, #tpu.memory_space<smem>>, %arg4: memref<12xi32, #tpu.memory_space<smem>>) -> (i32, i32, i32) {
    %0 = arith.index_cast %arg1 : i32 to index
    %1 = memref.load %arg2[%0] : memref<12xi32, #tpu.memory_space<smem>>
    %c0_i32 = arith.constant 0 : i32
    %c0_i32_0 = arith.constant 0 : i32
    return %1, %c0_i32, %arg0 : i32, i32, i32
  }
  func.func @transform_3(%arg0: i32, %arg1: i32, %arg2: memref<12xi32, #tpu.memory_space<smem>>, %arg3: memref<12xi32, #tpu.memory_space<smem>>, %arg4: memref<12xi32, #tpu.memory_space<smem>>) -> (i32, i32) {
    %c0_i32 = arith.constant 0 : i32
    return %arg1, %arg0 : i32, i32
  }
}

</mosaic_0001>

<bundles_post_ra>
// kernel: tpu_custom_call.1
= control target key start
LH: loop header
LB: loop body
LE: loop exit
PB: predicated region body
PF: predicated region fallthrough
CT: control target
= control target key end

     0   :  { %s1473_s0 = inlined_call_operand.vmem [shape: s32[12], index: 0, kind: input, shape index: {}]   ;;  %s1474_s3 = inlined_call_operand.vmem [shape: bf16[384,256], index: 3, kind: input, shape index: {}]   ;;  %s1475_s4 = inlined_call_operand.vmem [shape: f32[384,1], index: 4, kind: input, shape index: {}]   ;;  %s1476_s5 = inlined_call_operand.hbm [shape: bf16[8,256,256], index: 5, kind: input, shape index: {}]   ;;  %s1477_s6 = inlined_call_operand.hbm [shape: bf16[384,256], index: 6, kind: output, shape index: {}]   ;;  %s1478_s1 = inlined_call_operand.vmem [shape: s32[12], index: 1, kind: input, shape index: {}]   ;;  %s1479_s2 = inlined_call_operand.vmem [shape: s32[12], index: 2, kind: input, shape index: {}]  }
   0x1   :  { %1486 = sst [smem:[#allocation20_spill]] %s1476_s5  ;;  %s11_s23 = sshll.u32 %s1473_s0, 4  ;;  %s12_s23 = int_to_ptr.vmem [resolvable:$true] %s11_s23 }
   0x2   :  { %s15_s26 = sshll.u32 %s1478_s1, 4  ;;  %s929_s27 = scalar_lea.vmem %s12_s23, 16  ;;  %s16_s26 = int_to_ptr.vmem [resolvable:$true] %s15_s26 }
   0x3   :  { %p930_p0 = scmp.ne.s32.totalorder %s12_s23, %s929_s27  ;;  %p934_p1 = scmp.lt.s32.totalorder %s12_s23, %s12_s23 }
   0x4   :  { %p935_p2 = scmp.lt.s32.totalorder %s929_s27, %s929_s27 }
   0x6   :  { %p936_p3 = por %p935_p2, %p934_p1 }
   0x8   :  { %p937_p4 = pnand %p936_p3, %p930_p0 }
   0xa   :  { %940 = shalt.err (!%p937_p4)  }
   0xb   :  { %s1121_s28 = smov [#allocation3]   ;;  %s941_s29 = scalar_lea.vmem %s16_s26, 16 }
   0xc   :  { %14 = dma.vmem_to_smem %s12_s23, 16, %s1121_s28, [#allocation2] }
   0xd   :  { %p942_p5 = scmp.ne.s32.totalorder %s16_s26, %s941_s29  ;;  %p946_p6 = scmp.lt.s32.totalorder %s16_s26, %s16_s26 }
   0xe   :  { %p947_p7 = scmp.lt.s32.totalorder %s941_s29, %s941_s29 }
  0x10   :  { %p948_p8 = por %p947_p7, %p946_p6 }
  0x12   :  { %p949_p9 = pnand %p948_p8, %p942_p5 }
  0x14   :  { %952 = shalt.err (!%p949_p9)  }
  0x15   :  { %s1122_s0 = smov [#allocation4]   ;;  %s19_s7 = sshll.u32 %s1479_s2, 4  ;;  %s20_s7 = int_to_ptr.vmem [resolvable:$true] %s19_s7 }
  0x16   :  { %18 = dma.vmem_to_smem %s16_s26, 16, %s1122_s0, [#allocation2] }
  0x17   :  { %s953_s8 = scalar_lea.vmem %s20_s7, 16  ;;  %p958_p11 = scmp.lt.s32.totalorder %s20_s7, %s20_s7 }
  0x18   :  { %p954_p10 = scmp.ne.s32.totalorder %s20_s7, %s953_s8  ;;  %p959_p12 = scmp.lt.s32.totalorder %s953_s8, %s953_s8 }
  0x1a   :  { %p960_p13 = por %p959_p12, %p958_p11 }
  0x1c   :  { %p961_p0 = pnand %p960_p13, %p954_p10 }
  0x1e   :  { %964 = shalt.err (!%p961_p0)  }
  0x1f   :  { %s1123_s9 = smov [#allocation5]  }
  0x20   :  { %22 = dma.vmem_to_smem %s20_s7, 16, %s1123_s9, [#allocation2] }
  0x21   :  { %1067 = dma.done.wait [#allocation2], 48 }
  0x22   :  { %1068 = vsyncadd [#allocation2], 4294967248 }
  0x23   :  { %24 = sfence }
  0x24   :  { %25 = vsyncpa [#allocation7], 0 }
  0x25   :  { %27 = vsyncpa [#allocation7 + $0x1], 0 }
  0x26   :  { %28 = vsyncpa [#allocation8], 0 }
  0x27   :  { %30 = vsyncpa [#allocation8 + $0x1], 0  ;;  %s1178_s10 = smov 0   ;;  %s1180_s2 = smov 0  }
  0x28   :  { %s1182_s11 = smov 0   ;;  %s1184_s12 = smov 0  }
  0x29   :  { %s1186_s13 = smov 0   ;;  %s1188_s14 = smov 0  }
  0x2a   :  { %s1190_s15 = smov 0   ;;  %s1192_s16 = smov 0  }
  0x2b   :  { %s1194_s17 = smov 0   ;;  %s1196_s18 = smov 0  }
  0x2c   :  { %s1198_s19 = smov 0  }
  0x2d LB: > { %1487 = sst [smem:[#allocation15_spill]] %s1099_s14  ;;  %s680_s20 = sadd.s32 4294967295, %s1119_s19   ;;  %s1119_s19 = sphi %s1198_s19, %s36_s19   ;;  %s1115_s18 = sphi %s1196_s18, %s1513_s18   ;;  %s1111_s17 = sphi %s1194_s17, %s1505_s17   ;;  %s1107_s16 = sphi %s1192_s16, %s1512_s16   ;;  %s1103_s15 = sphi %s1190_s15, %s1504_s15   ;;  %s1099_s14 = sphi %s1188_s14, %s1503_s14   ;;  %s1095_s13 = sphi %s1186_s13, %s1511_s13   ;;  %s1091_s12 = sphi %s1184_s12, %s1510_s12   ;;  %s1087_s11 = sphi %s1182_s11, %s1509_s11   ;;  %s1083_s2 = sphi %s1180_s2, %s1508_s2   ;;  %s1079_s10 = sphi %s1178_s10, %s1507_s10  }
  0x2e   : > { %1488 = sst [smem:[#allocation16_spill]] %s1111_s17  ;;  %s681_s21 = sadd.s32 4294967294, %s1119_s19  }
  0x2f   : > { %s45_s22 = sadd.s32 1, %s1111_s17  ;;  %s48_s23 = sadd.s32 1, %s1115_s18 }
  0x30   : > { %p46_p1 = scmp.ge.s32.totalorder %s45_s22, 12  ;;  %s108_s24 = sld [smem:[#allocation3 + %s1111_s17]] }
  0x31   : > { %s115_s25 = sadd.s32 1, %s1099_s14  ;;  %p122_p2 = scmp.ne.s32.totalorder %s1099_s14, %s1095_s13 }
  0x32   : > { %s1515_s22 = smov (%p46_p1, %s45_s22), 0  ;;  %s1517_s23 = smov (!%p46_p1, %s48_s23), %s1115_s18 }
  0x33   : > { %1489 = sst [smem:[#allocation17_spill]] %s1515_s22  ;;  %p123_p3 = scmp.eq.s32.totalorder %s1119_s19, 0 }
  0x34   : > { %s109_s26 = sld [smem:[#allocation3 + %s1515_s22]]  ;;  %p50_p4 = scmp.ge.s32.totalorder %s1517_s23, 2 }
  0x35   : > { %p128_p5 = scmp.ne.s32.totalorder %s1095_s13, %s1091_s12  ;;  %p1245_p6 = por %p123_p3, %p122_p2 }
  0x36   : > { %p129_p7 = scmp.eq.s32.totalorder %s680_s20, 0  ;;  %s1519_s23 = smov (%p50_p4, %s1517_s23), 0 }
  0x37   : > { %1491 = sst [smem:[#allocation18_spill]] %s1519_s23  ;;  %s138_s29 = ssub.s32 %s1111_s17, %s1515_s22 }
  0x38   : > { %p1253_p8 = por %p129_p7, %p128_p5  ;;  %s111_s0 = ssub.s32 %s1115_s18, %s1519_s23 }
  0x39   : > { %s143_s1 = sadd.s32 1, %s1087_s11  ;;  %s140_s7 = sor.u32 %s138_s29, %s111_s0 }
  0x3a   : > { %s1492_s28 = scalar_select %p1253_p8, 1, 0 }
  0x3b   : > { %s110_s30 = ssub.s32 %s108_s24, %s109_s26  ;;  %p141_p9 = scmp.eq.s32.totalorder %s140_s7, 0 }
  0x3c   : > { %s112_s8 = sor.u32 %s111_s0, %s110_s30  ;;  %p153_p11 = scmp.ne.s32.totalorder %s1087_s11, %s1083_s2 }
  0x3d   : > { %p113_p10 = scmp.eq.s32.totalorder %s112_s8, 0  ;;  %p154_p12 = scmp.eq.s32.totalorder %s680_s20, 23 }
  0x3e   : > { %s1265_s9 = scalar_select %p141_p9, %s1087_s11, %s143_s1  }
  0x3f   : > { %s1268_s12 = scalar_select %p113_p10, %s1099_s14, %s115_s25  }
  0x40   : > { %p159_p13 = scmp.ne.s32.totalorder %s1083_s2, %s1079_s10  ;;  %p160_p0 = scmp.eq.s32.totalorder %s681_s21, 23 }
  0x41   : > { %1493 = sst [smem:[#allocation19_spill]] %s1268_s12  ;;  %p1276_p1 = por %p154_p12, %p153_p11 }
  0x42   : > { %p804_p2 = scmp.lt.s32.totalorder %s1119_s19, 24  ;;  %p1281_p3 = por %p160_p0, %p159_p13 }
  0x43   : > { %s1494_s24 = scalar_select %p1276_p1, 1, 0 }
  0x44   : > { %s1495_s26 = scalar_select %p1281_p3, 1, 0 }
  0x45   : > { %s203_s29 = sand.u32 1, %s1099_s14   ;;  %p1288_p4 = pnand %p804_p2, %p1245_p6 }
  0x46   : > { %s684_s25 = sshll.u32 %s203_s29, 7  ;;  %p687_p5 = scmp.ge.s32.totalorder %s1119_s19, 1 }
  0x47   : > { %s788_s0 = scalar_select %p1245_p6, [#allocation3], [#allocation10] }
  0x48   : > { %s789_s21 = scalar_select %p1245_p6, %s1111_s17, 0 }
  0x49   : > { %s1521_s0 = smov (!%p804_p2, %s788_s0), [#allocation11]  ;;  %s207_s30 = scalar_lea.vmem [#allocation6], %s684_s25 }
  0x4a   : > { %s1523_s21 = smov (!%p804_p2, %s789_s21), 0  ;;  %s216_s7 = sshll.u32 %s207_s30, 4  ;;  %s1299_s7 = int_to_ptr.vmem [resolvable:$true] %s216_s7 }
  0x4b   : > { %s208_s1 = sld [smem:[%s1521_s0 + %s1523_s21]]  ;;  %p224_p7 = scmp.lt.s32.totalorder %s1119_s19, 25 }
  0x4c   : > { %s1498_s5 = sld [smem:[#allocation20_spill]]  ;;  %s1311_s25 = scalar_lea.sflag [#allocation7], %s203_s29 }
  0x4d   : > { %p1301_p9 = pnand %p687_p5, %p224_p7  ;;  %p967_p10 = pneg %p1288_p4 }
  0x51   : > { %s685_s23 = sshll.u32 %s208_s1, 6 }
  0x52   : > { %s213_s22 = sadd.s32 %s1115_s18, %s685_s23  ;;  %s970_s17 = scalar_lea.hbm %s1498_s5, 32768 }
  0x53   : > { %s686_s12 = sshll.u32 %s213_s22, 6 }
  0x54   : > { %s1309_s14 = scalar_lea.hbm %s1498_s5, %s686_s12 }
  0x55   : > { %s965_s0 = scalar_lea.hbm %s1309_s14, 2048  ;;  %p971_p13 = scmp.lt.u32.totalorder %s1309_s14, %s1498_s5 }
  0x56   : > { %p966_p6 = scmp.ne.s32.totalorder %s1309_s14, %s965_s0  ;;  %p972_p0 = scmp.lt.u32.totalorder %s970_s17, %s965_s0 }
  0x57   : > { %p974_p5 = scmp.lt.u32.totalorder %s965_s0, %s1309_s14 }
  0x58   : > { %p968_p11 = pnand %p967_p10, %p966_p6  ;;  %p973_p2 = por %p972_p0, %p971_p13 }
  0x5a   : > { %p969_p12 = pneg %p968_p11  ;;  %p975_p7 = por %p974_p5, %p973_p2 }
  0x5c   : > { %p976_p3 = pnand %p975_p7, %p969_p12 }
  0x5e   : > { %979 = shalt.err (!%p976_p3)
}
  0x5f   : > { %s980_s29 = scalar_lea.vmem %s1299_s7, 2048  ;;  %s1124_s1 = smov [#allocation6]  }
  0x60   : > { %p981_p6 = scmp.ne.s32.totalorder %s1299_s7, %s980_s29  ;;  %s985_s30 = sshll.u32 %s1124_s1, 4  ;;  %s986_s30 = int_to_ptr.vmem [resolvable:$false] %s985_s30 }
  0x61   : > { %s987_s27 = scalar_lea.vmem %s986_s30, 4096  ;;  %p988_p8 = scmp.lt.s32.totalorder %s1299_s7, %s986_s30 }
  0x62   : > { %p983_p11 = pnand %p981_p6, %p967_p10  ;;  %p989_p13 = scmp.lt.s32.totalorder %s987_s27, %s980_s29 }
  0x64   : > { %p984_p1 = pneg %p983_p11  ;;  %p990_p0 = por %p989_p13, %p988_p8 }
  0x66   : > { %p991_p2 = pnand %p990_p0, %p984_p1 }
  0x68   : > { %994 = shalt.err (!%p991_p2)
}
  0x69   : > { %s1125_s0 = smov 128   ;;  %s1126_s22 = smov 64  }
  0x6a   : > { %s1127_s23 = smov 4   ;;  %228 = sbr.rel (%p1301_p9) target bundleno = 416 (0x1a0), region = 32 }
  0x6b   : > { %799 = dma.hbm_to_vmem [thread:$0]  (!%p1288_p4), %s1309_s14, 2048, %s1299_s7, %s1311_s25, %s1125_s0, %s1126_s22, %s1127_s23  }
  0x6c   : > { %s230_s17 = sand.u32 (!%p1301_p9), 1, %s1095_s13   ;;  %p1499_p8 = scmp.ne.s32.totalorder (!%p1301_p9), %s1492_s28, 0 }
  0x6d   : > { %s688_s12 = sshll.u32 (!%p1301_p9), %s230_s17, 7  ;;  %s231_s21 = scalar_lea.sflag (!%p1301_p9), [#allocation7], %s230_s17 }
  0x6e   : > { %s1342_s29 = scalar_lea.vmem (!%p1301_p9), [#allocation6], %s688_s12 }
  0x71   : > { %1070 = dma.done.wait (%p1499_p8), %s231_s21, 2048  }
  0x72   : > { %1072 = vsyncadd (%p1499_p8), %s231_s21, 4294965248  ;;  %s267_s14 = sand.u32 1, %s1083_s2   ;;  %s270_s20 = sld [smem:[#allocation5 + %s1103_s15]] }
  0x73   : > { %s279_s7 = sld [smem:[#allocation5 + %s1103_s15]]  ;;  %s689_s25 = sshll.u32 %s267_s14, 4 }
  0x74   : > { %s1352_s8 = sld [smem:[#allocation4 + %s1103_s15]]  ;;  %s1366_s5 = scalar_lea.vmem [#allocation9], %s689_s25 }
  0x78   : > { %s690_s1 = sshll.u32 %s270_s20, 2 }
  0x79   : > { %s693_s30 = sshll.u32 %s279_s7, 2  ;;  %p272_p1 = scmp.lt.s32.totalorder %s690_s1, 47 }
  0x7a   : > { %p281_p3 = scmp.lt.s32.totalorder %s693_s30, 47  ;;  %p695_p4 = scmp.ne.s32.totalorder %s1352_s8, 1 }
  0x7b   : > { %s1525_s1 = smov (!%p272_p1, %s690_s1), 47  ;;  %v907_v0 = vld [vmem:[%s1342_s29 + $0x40] sm:$0xff] (!%p695_p4)   ;;  %v1128_v2 = vmov (!%p695_p4), 0   ;;  %v909_v3 = vld [vmem:[%s1342_s29 + $0x48] sm:$0xff] (!%p695_p4)   ;;  %v911_v5 = vld [vmem:[%s1342_s29 + $0x50] sm:$0xff] (!%p695_p4)  }
  0x7c   : > { %s1527_s30 = smov (!%p281_p3, %s693_s30), 47  ;;  %s727_s28 = sshll.u32 %s1525_s1, 3  ;;  %v908_v1 = vld [vmem:[%s1342_s29] sm:$0xff] (!%p695_p4)   ;;  %906 = vset.pattern.permute.xlu1 (!%p695_p4), %v1128_v2  ;;  %905 = vset.pattern.permute.xlu0 (!%p695_p4), %v1128_v2  ;;  %v910_v4 = vld [vmem:[%s1342_s29 + $0x8] sm:$0xff] (!%p695_p4)   ;;  %v912_v6 = vld [vmem:[%s1342_s29 + $0x10] sm:$0xff] (!%p695_p4)  }
  0x7d   : > { %s1359_s22 = scalar_lea.vmem %s1474_s3, %s727_s28  ;;  %s694_s23 = sshll.u32 %s1527_s30, 3  ;;  %744 = vmatprep.subr.bf16.mxu0 (!%p695_p4), %v907_v0  ;;  %772 = vmatprep.subr.bf16.mxu1 (!%p695_p4), %v907_v0  ;;  %v913_v7 = vld [vmem:[%s1342_s29 + $0x58] sm:$0xff] (!%p695_p4)   ;;  %v915_v9 = vld [vmem:[%s1342_s29 + $0x60] sm:$0xff] (!%p695_p4)   ;;  %v917_v11 = vld [vmem:[%s1342_s29 + $0x68] sm:$0xff] (!%p695_p4)  }
  0x7e   : > { %s1364_s21 = scalar_lea.vmem %s1475_s4, %s694_s23  ;;  %294 = sbr.rel (%p695_p4) target bundleno = 379 (0x17b), region = 40  ;;  %745 = vmatpush3.bf16.msra.mxu0 (!%p695_p4), %v908_v1  ;;  %780 = vmatpush3.bf16.msra.mxu1 (!%p695_p4), %v908_v1  ;;  %v914_v8 = vld [vmem:[%s1342_s29 + $0x18] sm:$0xff] (!%p695_p4)   ;;  %v916_v10 = vld [vmem:[%s1342_s29 + $0x20] sm:$0xff] (!%p695_p4)   ;;  %v918_v14 = vld [vmem:[%s1342_s29 + $0x28] sm:$0xff] (!%p695_p4)  }
  0x7f   : > { %746 = vmatprep.subr.bf16.mxu0 (!%p695_p4), %v909_v3  ;;  %773 = vmatprep.subr.bf16.mxu1 (!%p695_p4), %v909_v3  ;;  %v925_v12 = vld [vmem:[%s1359_s22 + $0x4] ss:$8 sps:$4 sm:$0xff] (!%p695_p4)   ;;  %v928_v13 = vld [vmem:[%s1359_s22 + $0x14] ss:$8 sps:$4 sm:$0xff] (!%p695_p4)   ;;  %v923_v23 = vld [vmem:[%s1359_s22] ss:$8 sps:$4 sm:$0xff] (!%p695_p4)  }
  0x80   : > { %v498_v15 = vld [vmem:[%s1364_s21 + $0x10] sm:$0xff] (!%p695_p4)  ;;  %v496_v16 = vld [vmem:[%s1364_s21] sm:$0xff] (!%p695_p4)  ;;  %479 = vmatprep.mubr.bf16.mxu0 (!%p695_p4), %v925_v12  ;;  %487 = vmatprep.mubr.bf16.mxu1 (!%p695_p4), %v928_v13  ;;  %v499_v19 = vld [vmem:[%s1364_s21 + $0x18] sm:$0xff] (!%p695_p4) }
  0x81   : > { %v919_v17 = vld [vmem:[%s1342_s29 + $0x70] sm:$0xff] (!%p695_p4)   ;;  %512 = vperm.xlu1 (!%p695_p4), %906, %v498_v15   ;;  %502 = vperm.xlu0 (!%p695_p4), %905, %v496_v16   ;;  %v497_v20 = vld [vmem:[%s1364_s21 + $0x8] sm:$0xff] (!%p695_p4)  ;;  %v921_v21 = vld [vmem:[%s1342_s29 + $0x78] sm:$0xff] (!%p695_p4)  }
  0x82   : > { %747 = vmatpush3.bf16.msra.mxu0 (!%p695_p4), %v910_v4  ;;  %781 = vmatpush3.bf16.msra.mxu1 (!%p695_p4), %v910_v4  ;;  %v920_v18 = vld [vmem:[%s1342_s29 + $0x30] sm:$0xff] (!%p695_p4)   ;;  %v922_v22 = vld [vmem:[%s1342_s29 + $0x38] sm:$0xff] (!%p695_p4)  }
  0x83   : > { %748 = vmatprep.subr.bf16.mxu0 (!%p695_p4), %v911_v5  ;;  %774 = vmatprep.subr.bf16.mxu1 (!%p695_p4), %v911_v5  ;;  %v926_v24 = vld [vmem:[%s1359_s22 + $0x10] ss:$8 sps:$4 sm:$0xff] (!%p695_p4)  }
  0x85   : > { %517 = vperm.xlu1 %906, %v499_v19   ;;  %507 = vperm.xlu0 %905, %v497_v20  }
  0x86   : > { %749 = vmatpush3.bf16.msra.mxu0 %v912_v6  ;;  %782 = vmatpush3.bf16.msra.mxu1 %v912_v6 }
  0x87   : > { %750 = vmatprep.subr.bf16.mxu0 %v913_v7  ;;  %775 = vmatprep.subr.bf16.mxu1 %v913_v7 }
  0x8a   : > { %751 = vmatpush3.bf16.msra.mxu0 %v914_v8  ;;  %783 = vmatpush3.bf16.msra.mxu1 %v914_v8 }
  0x8b   : > { %752 = vmatprep.subr.bf16.mxu0 %v915_v9  ;;  %776 = vmatprep.subr.bf16.mxu1 %v915_v9 }
  0x8e   : > { %753 = vmatpush3.bf16.msra.mxu0 %v916_v10  ;;  %784 = vmatpush3.bf16.msra.mxu1 %v916_v10 }
  0x8f   : > { %754 = vmatprep.subr.bf16.mxu0 %v917_v11  ;;  %777 = vmatprep.subr.bf16.mxu1 %v917_v11 }
  0x92   : > { %755 = vmatpush3.bf16.msra.mxu0 %v918_v14  ;;  %785 = vmatpush3.bf16.msra.mxu1 %v918_v14 }
  0x93   : > { %756 = vmatprep.subr.bf16.mxu0 %v919_v17  ;;  %778 = vmatprep.subr.bf16.mxu1 %v919_v17 }
  0x96   : > { %757 = vmatpush3.bf16.msra.mxu0 %v920_v18  ;;  %786 = vmatpush3.bf16.msra.mxu1 %v920_v18 }
  0x97   : > { %758 = vmatprep.subr.bf16.mxu0 %v921_v21  ;;  %779 = vmatprep.subr.bf16.mxu1 %v921_v21 }
  0x9a   : > { %759 = vmatpush3.bf16.msra.mxu0 %v922_v22  ;;  %787 = vmatpush3.bf16.msra.mxu1 %v922_v22 }
  0x9d   : > { %480 = vmatmul.mubr.bf16.vlgmr.msra.gmra.mrb[0].mxu0 %v923_v23  ;;  %488 = vmatmul.mubr.bf16.vlgmr.msra.gmra.mrb[0].mxu1 %v926_v24 }
 0x100   : > { %v513_v25 = vpop.permute.xlu1 %512  ;;  %v503_v26 = vpop.permute.xlu0 %502 }
 0x104   : > { %v518_v39 = vpop.permute.xlu1 %517  ;;  %v508_v40 = vpop.permute.xlu0 %507 }
 0x170   : > { %v760_v27 = vpop.f32.mrb[0].mxu0  ;;  %v766_v28 = vpop.f32.mrb[0].mxu1 }
 0x171   : > { %v761_v29 = vpop.f32.mrb[1].mxu0  ;;  %v767_v30 = vpop.f32.mrb[1].mxu1 }
 0x172   : > { %v762_v31 = vadd.f32 %v761_v29, %v760_v27  ;;  %v768_v32 = vadd.f32 %v767_v30, %v766_v28  ;;  %v763_v33 = vpop.f32.mrb[2].mxu0  ;;  %v769_v34 = vpop.f32.mrb[2].mxu1 }
 0x173   : > { %v764_v35 = vpop.f32.mrb[3].mxu0  ;;  %v770_v36 = vpop.f32.mrb[3].mxu1 }
 0x174   : > { %v765_v37 = vadd.f32 %v764_v35, %v763_v33  ;;  %v771_v38 = vadd.f32 %v770_v36, %v769_v34  ;;  %v520_v41 = vmul.f32 %v762_v31, %v503_v26  ;;  %v522_v42 = vmul.f32 %v768_v32, %v513_v25 }
 0x176   : > { %v521_v43 = vmul.f32 %v765_v37, %v508_v40  ;;  %v523_v44 = vmul.f32 %v771_v38, %v518_v39 }
 0x178   : > { %v736_v45 = vpack.c.bf16 %v521_v43, %v520_v41  ;;  %v741_v46 = vpack.c.bf16 %v523_v44, %v522_v42 }
 0x17a   : > { %737 = vst [vmem:[%s1366_s5] sm:$0xff] %v736_v45   ;;  %743 = vst [vmem:[%s1366_s5 + $0x8] sm:$0xff] %v741_v46  }
 0x17b PF: > { %p720_p9 = scmp.ne.s32.totalorder %s1352_s8, 0 }
 0x17c   : > { %v1129_v47 = vmov (!%p720_p9), 0  }
 0x17d   : > { %547 = sbr.rel (%p720_p9) target bundleno = 388 (0x184), region = 44  ;;  %548 = vst [vmem:[%s1366_s5] sm:$0xf] (!%p720_p9), %v1129_v47  ;;  %549 = vst [vmem:[%s1366_s5 + $0x4] sm:$0xf] (!%p720_p9), %v1129_v47 }
 0x17e   : > { %550 = vst [vmem:[%s1366_s5 + $0x8] sm:$0xf] (!%p720_p9), %v1129_v47  ;;  %551 = vst [vmem:[%s1366_s5 + $0xc] sm:$0xf] (!%p720_p9), %v1129_v47 }
 0x184 PF: > { %s732_s29 = sshll.u32 %s1103_s15, 3  ;;  %s568_s7 = sshll.u32 %s1366_s5, 4  ;;  %s1403_s7 = int_to_ptr.vmem [resolvable:$true] %s568_s7 }
 0x185   : > { %s565_s20 = sadd.s32 %s1107_s16, %s732_s29  ;;  %s1412_s28 = scalar_lea.sflag [#allocation8], %s267_s14 }
 0x186   : > { %s724_s8 = sshll.u32 %s565_s20, 6  ;;  %s995_s27 = scalar_lea.vmem %s1403_s7, 256 }
 0x187   : > { %s1408_s30 = scalar_lea.hbm %s1477_s6, %s724_s8  ;;  %p996_p10 = scmp.ne.s32.totalorder %s1403_s7, %s995_s27 }
 0x188   : > { %p1500_p12 = scmp.ne.s32.totalorder %s1494_s24, 0  ;;  %s1130_s5 = smov [#allocation9]  }
 0x189   : > { %s999_s15 = sshll.u32 %s1130_s5, 4  ;;  %s1000_s15 = int_to_ptr.vmem [resolvable:$false] %s999_s15 }
 0x18a   : > { %p997_p5 = pnand %p996_p10, %p1500_p12  ;;  %s1001_s16 = scalar_lea.vmem %s1000_s15, 512 }
 0x18b   : > { %p1002_p6 = scmp.lt.s32.totalorder %s1403_s7, %s1000_s15  ;;  %p1003_p11 = scmp.lt.s32.totalorder %s1001_s16, %s995_s27 }
 0x18c   : > { %p998_p7 = pneg %p997_p5 }
 0x18d   : > { %p1004_p13 = por %p1003_p11, %p1002_p6 }
 0x18f   : > { %p1005_p0 = pnand %p1004_p13, %p998_p7 }
 0x191   : > { %1008 = shalt.err (!%p1005_p0)
}
 0x192   : > { %s1009_s14 = scalar_lea.hbm %s1408_s30, 256  ;;  %s1013_s23 = scalar_lea.hbm %s1477_s6, 6144 }
 0x193   : > { %p1010_p2 = scmp.ne.s32.totalorder %s1408_s30, %s1009_s14  ;;  %p1014_p3 = scmp.lt.u32.totalorder %s1408_s30, %s1477_s6 }
 0x194   : > { %p1015_p4 = scmp.lt.u32.totalorder %s1013_s23, %s1009_s14  ;;  %p1017_p10 = scmp.lt.u32.totalorder %s1009_s14, %s1408_s30 }
 0x195   : > { %p1011_p8 = pnand %p1010_p2, %p1500_p12 }
 0x196   : > { %p1016_p9 = por %p1015_p4, %p1014_p3 }
 0x197   : > { %p1012_p1 = pneg %p1011_p8 }
 0x198   : > { %p1018_p5 = por %p1017_p10, %p1016_p9 }
 0x19a   : > { %p1019_p7 = pnand %p1018_p5, %p1012_p1 }
 0x19c   : > { %1022 = shalt.err (!%p1019_p7)
}
 0x19d   : > { %s1131_s21 = smov 64   ;;  %s1132_s29 = smov 128  }
 0x19e   : > { %s1133_s20 = smov 4  }
 0x19f   : > { %792 = dma.vmem_to_hbm [thread:$0]  (%p1500_p12), %s1403_s7, 256, %s1408_s30, %s1412_s28, %s1131_s21, %s1132_s29, %s1133_s20  }
 0x1a0 PF: > { %p805_p6 = scmp.ge.s32.totalorder %s1119_s19, 2  ;;  %s583_s8 = sand.u32 1, %s1079_s10  }
 0x1a1   : > { %p1501_p11 = scmp.ne.s32.totalorder %s1495_s26, 0  ;;  %s584_s25 = scalar_lea.sflag [#allocation8], %s583_s8 }
 0x1a3   : > { %p801_p13 = pnand %p805_p6, %p1501_p11 }
 0x1a5   : > { %1074 = dma.done.wait (!%p801_p13), %s584_s25, 256  }
 0x1a6   : > { %1076 = vsyncadd (!%p801_p13), %s584_s25, 4294967040  ;;  %s36_s19 = sadd.s32 1, %s1119_s19   ;;  %s1502_s24 = sld [smem:[#allocation15_spill]] }
 0x1a7   : > { %p33_p0 = scmp.ge.s32.totalorder %s36_s19, 26   ;;  %s1503_s14 = sld [smem:[#allocation19_spill]] }
 0x1a8   : > { %s1504_s15 = sld [smem:[#allocation16_spill]]  ;;  %s1505_s17 = sld [smem:[#allocation17_spill]] }
 0x1a9   : > { %s1506_s7 = sld [smem:[#allocation18_spill]]  ;;  %s1507_s10 = smov %s1083_s2 }
 0x1aa   : > { %s1508_s2 = smov %s1087_s11  ;;  %s1509_s11 = smov %s1265_s9 }
 0x1ab   : > { %s1510_s12 = smov %s1095_s13  ;;  %s1512_s16 = smov %s1115_s18 }
 0x1ac   : > { %s1511_s13 = smov %s1502_s24  ;;  %35 = sbr.rel (!%p33_p0) target bundleno = 45 (0x2d), region = 91 }
 0x1af   : > { %s1513_s18 = smov %s1506_s7 }
 0x1b3   :  { %589 = vsyncpa [#allocation7], 1 }
 0x1b4   :  { %591 = vsyncpa [#allocation7 + $0x1], 1 }
 0x1b5   :  { %592 = vsyncpa [#allocation8], 1 }
 0x1b6   :  { %594 = vsyncpa [#allocation8 + $0x1], 1 }

</bundles_post_ra>
